<compile_context>
chip_gen: v6e
topology: v6e:2x2x1
jax: 0.10.0
libtpu: 0.0.40
codegen_flags: <defaults>
</compile_context>

<pallas_src>
import math
import functools

import jax
import jax.numpy as jnp
from jax.experimental import pallas as pl
from jax.experimental.pallas import tpu as pltpu


def _round_up(x: int, m: int) -> int:
    return (x + m - 1) // m * m


def _sin_time_embed_kernel(t_ref, freqs_ref, o_ref, *, half: int):
    # t_ref:    (TB, 1)  f32 timesteps for this row tile
    # freqs_ref:(1, dim) f32 frequencies, duplicated for the sin/cos halves
    # o_ref:    (TB, dim) output tile (single full-width store)
    dim = o_ref.shape[1]
    col = jax.lax.broadcasted_iota(jnp.int32, (1, dim), 1)     # cheap per step
    is_cos = col >= half

    x = t_ref[...] * freqs_ref[...]                            # (TB, dim), VPU
    # Both branches are elementwise; predicate broadcasts along sublanes.
    o_ref[...] = jnp.where(is_cos, jnp.cos(x), jnp.sin(x)).astype(o_ref.dtype)


def sinusoidal_time_embedding(t: jax.Array, dim: int,
                              out_dtype=jnp.float32) -> jax.Array:
    """t: (B,) timesteps -> (B, dim) embedding (matches the PyTorch module)."""
    assert dim % 2 == 0 and dim >= 2, "dim must be even and >= 2"
    half = dim // 2
    # NOTE: for dim == 2 PyTorch divides by zero (inf/nan freqs); we guard with
    # max(half - 1, 1), which intentionally diverges from that degenerate case.
    scale = math.log(10000.0) / max(half - 1, 1)

    B = t.shape[0]

    # Precompute frequencies once on the host/XLA side (hoisted out of the
    # per-grid-step hot loop); duplicate for the cos half so the kernel does a
    # single broadcast multiply across the full width.
    freqs_half = jnp.exp(jnp.arange(half, dtype=jnp.float32) * jnp.float32(-scale))
    freqs = jnp.concatenate([freqs_half, freqs_half]).reshape(1, dim)

    t2 = t.astype(jnp.float32).reshape(B, 1)

    # --- Row-tile sizing ---------------------------------------------------
    # Per-output-buffer budget ~8 MiB: double-buffered that is 16 MiB, safely
    # under the 32 MiB scoped-VMEM default on v5e/v6e/v7x, while being well
    # past the ~1 MiB tile-size knee for HBM-writeback efficiency.
    out_itemsize = jnp.dtype(out_dtype).itemsize
    bytes_per_row = max(dim * out_itemsize, dim * 4)           # f32 intermediates
    per_buf_budget = 8 * 1024 * 1024
    cap_rows = max(8, (per_buf_budget // bytes_per_row) // 8 * 8)
    # When B is large, keep >= 2 blocks so a "parallel" grid can shard across
    # both v7x TensorCores instead of collapsing to one max-size tile.
    tb_two_blocks = _round_up(pl.cdiv(B, 2), 8)
    TB = max(8, min(cap_rows, tb_two_blocks))
    grid = (pl.cdiv(B, TB),)          # ragged last block handled by Pallas

    out = pl.pallas_call(
        functools.partial(_sin_time_embed_kernel, half=half),
        out_shape=jax.ShapeDtypeStruct((B, dim), out_dtype),
        grid=grid,
        in_specs=[
            pl.BlockSpec((TB, 1), lambda i: (i, 0)),
            pl.BlockSpec((1, dim), lambda i: (0, 0)),   # constant block: DMA'd once
        ],
        out_specs=pl.BlockSpec((TB, dim), lambda i: (i, 0)),
        compiler_params=pltpu.CompilerParams(
            dimension_semantics=("parallel",),
        ),
        cost_estimate=pl.CostEstimate(
            flops=2 * B * dim,                      # mul + select
            transcendentals=2 * B * dim,            # sin and cos both evaluated
            bytes_accessed=B * dim * out_itemsize + B * 4 + dim * 4,
        ),
    )(t2, freqs)
    return out


def _reference(t, dim):
    half = dim // 2
    scale = math.log(10000.0) / max(half - 1, 1)
    freqs = jnp.exp(jnp.arange(half, dtype=jnp.float32) * -scale)
    emb = t[:, None].astype(jnp.float32) * freqs[None, :]
    return jnp.concatenate([jnp.sin(emb), jnp.cos(emb)], axis=1)


if __name__ == "__main__":
    key = jax.random.PRNGKey(0)
    B, dim = 8, 64
    # Timesteps like a diffusion schedule index, as floats in [0, 1000).
    t = jax.random.uniform(key, (B,), dtype=jnp.float32, minval=0.0, maxval=1000.0)

    out = sinusoidal_time_embedding(t, dim)
    out = jax.block_until_ready(out)

    ref = _reference(t, dim)
    assert out.shape == (B, dim), out.shape
    # Tolerance: for |t*freq| up to ~1e3, f32 sin/cos range-reduction details
    # can differ slightly between the Mosaic (Pallas) and XLA lowerings; the
    # resulting deviation is bounded well below 5e-4.
    assert jnp.allclose(out, ref, atol=5e-4, rtol=1e-5), (
        "mismatch vs reference, max abs err = %e" % float(jnp.max(jnp.abs(out - ref))))

    print("KERNEL_OK")
</pallas_src>

<mosaic_0001>
module attributes {stable_mosaic.version = 11 : i64} {
  func.func @_sin_time_embed_kernel(%arg0: i32, %arg1: memref<8x1xf32, #tpu.memory_space<vmem>>, %arg2: memref<1x64xf32, #tpu.memory_space<vmem>>, %arg3: memref<8x64xf32, #tpu.memory_space<vmem>>) attributes {dimension_semantics = [#tpu.dimension_semantics<parallel>], iteration_bounds = array<i64: 1>, scalar_prefetch = 0 : i64, scratch_operands = 0 : i64, tpu.core_type = #tpu.core_type<tc>, window_params = [{transform_indices = @transform_0, window_bounds = array<i64: 8, 1>}, {pipeline_mode = #tpu.pipeline_mode<synchronous>, transform_indices = @transform_1, window_bounds = array<i64: 1, 64>}, {transform_indices = @transform_2, window_bounds = array<i64: 8, 64>}]} {
    %0 = tpu.iota {dimensions = array<i32: 1>} : vector<1x64xi32>
    %c32_i32 = arith.constant 32 : i32
    %1 = vector.broadcast %c32_i32 : i32 to vector<1x64xi32>
    %2 = arith.cmpi sge, %0, %1 : vector<1x64xi32>
    %c0 = arith.constant 0 : index
    %c0_0 = arith.constant 0 : index
    %3 = vector.load %arg1[%c0, %c0_0] : memref<8x1xf32, #tpu.memory_space<vmem>>, vector<8x1xf32>
    %c0_1 = arith.constant 0 : index
    %c0_2 = arith.constant 0 : index
    %4 = vector.load %arg2[%c0_1, %c0_2] : memref<1x64xf32, #tpu.memory_space<vmem>>, vector<1x64xf32>
    %5 = vector.broadcast %3 : vector<8x1xf32> to vector<8x64xf32>
    %6 = vector.broadcast %4 : vector<1x64xf32> to vector<8x64xf32>
    %7 = arith.mulf %5, %6 : vector<8x64xf32>
    %8 = math.cos %7 : vector<8x64xf32>
    %9 = math.sin %7 : vector<8x64xf32>
    %10 = vector.shape_cast %2 : vector<1x64xi1> to vector<1x64xi1>
    %11 = vector.broadcast %10 : vector<1x64xi1> to vector<8x64xi1>
    %12 = arith.select %11, %8, %9 : vector<8x64xi1>, vector<8x64xf32>
    %c0_3 = arith.constant 0 : index
    %c0_4 = arith.constant 0 : index
    %13 = vector.load %arg3[%c0_3, %c0_4] : memref<8x64xf32, #tpu.memory_space<vmem>>, vector<8x64xf32>
    tpu.vector_store %arg3[%c0_3, %c0_4], %12 {strides = array<i32>} : memref<8x64xf32, #tpu.memory_space<vmem>>, vector<8x64xf32>,
    return
  }
  func.func @transform_0(%arg0: i32) -> (i32, i32) {
    %c0_i32 = arith.constant 0 : i32
    %c0_i32_0 = arith.constant 0 : i32
    return %arg0, %c0_i32 : i32, i32
  }
  func.func @transform_1(%arg0: i32) -> (i32, i32) {
    %c0_i32 = arith.constant 0 : i32
    %c0_i32_0 = arith.constant 0 : i32
    %c0_i32_1 = arith.constant 0 : i32
    return %c0_i32, %c0_i32_0 : i32, i32
  }
  func.func @transform_2(%arg0: i32) -> (i32, i32) {
    %c0_i32 = arith.constant 0 : i32
    %c0_i32_0 = arith.constant 0 : i32
    return %arg0, %c0_i32 : i32, i32
  }
}

</mosaic_0001>

<bundles_post_ra>
// kernel: tpu_custom_call.1
= control target key start
LH: loop header
LB: loop body
LE: loop exit
PB: predicated region body
PF: predicated region fallthrough
CT: control target
= control target key end

     0   :  { %v303_v1 = vmov 0   ;;  %s357_s0 = inlined_call_operand.vmem [shape: f32[8,1], index: 0, kind: input, shape index: {}]   ;;  %s358_s1 = inlined_call_operand.vmem [shape: f32[1,64], index: 1, kind: input, shape index: {}]   ;;  %s359_s2 = inlined_call_operand.hbm [shape: f32[8,64], index: 2, kind: output, shape index: {}]  }
   0x1   :  { %v15_v0 = vld [vmem:[%s357_s0] sm:$0xff]  ;;  %276 = vset.pattern.permute.xlu0 %v303_v1 }
   0x2   :  { %19 = vperm.xlu0 %276, %v15_v0  }
   0x3   :  { %7 = vsyncpa [#allocation3], 0  ;;  %v255_v2 = vld [vmem:[%s358_s1] ss:$0 sm:$0xff]  ;;  %v304_v15 = vmov 683565275  }
   0x4   :  { %v305_v17 = vmov 2475754826   ;;  %v306_v20 = vmov 2131351028   ;;  %v307_v23 = vmov 2102212464  }
   0x5   :  { %v308_v26 = vmov 920167782   ;;  %v309_v29 = vmov 1326507024   ;;  %s310_s0 = smov [#allocation2]  }
   0x6   :  { %s247_s1 = sshll.u32 %s310_s0, 4  ;;  %s248_s1 = int_to_ptr.vmem [resolvable:$true] %s247_s1 }
   0x7   :  { %s281_s13 = scalar_lea.vmem %s248_s1, 128  ;;  %p286_p1 = scmp.lt.s32.totalorder %s248_s1, %s248_s1 }
   0x8   :  { %p282_p0 = scmp.ne.s32.totalorder %s248_s1, %s281_s13  ;;  %p287_p2 = scmp.lt.s32.totalorder %s281_s13, %s281_s13 }
   0xa   :  { %p288_p3 = por %p287_p2, %p286_p1 }
   0xc   :  { %p289_p4 = pnand %p288_p3, %p282_p0 }
  0x7d   :  { %v20_v3 = vpop.permute.xlu0 %19 }
  0x7e   :  { %v332_v4 = vmul.f32 %v255_v2, %v20_v3 }
  0x80   :  { %v32_v5 = vand.u32 2139095040, %v332_v4  ;;  %v29_v9 = vand.u32 2147483647, %v332_v4  ;;  %vm31_vm7 = vcmp.lt.s32.totalorder %v332_v4, 0 }
  0x82   :  { %v33_v6 = vshrl.u32 %v32_v5, 23  ;;  %v36_v12 = vand.u32 8388607, %v29_v9  ;;  %vm30_vm8 = vcmp.le.f32.partialorder %v29_v9, 0.7853982 }
  0x84   :  { %v256_v7 = vadd.s32 4294967169, %v33_v6  ;;  %v37_v31 = vor.u32 8388608, %v36_v12 }
  0x86   :  { %v39_v8 = vadd.s32 1, %v256_v7  ;;  %v77_v45 = vshll.u32 %v37_v31, 8 }
  0x88   :  { %vm40_vm0 = vcmp.gt.s32.totalorder %v39_v8, 0 }
  0x89   :  { %v41_v10 = vsel %vm40_vm0, %v39_v8, 0  ;;  %vm121_vm0 = vweird.f32 %v332_v4 }
  0x8a   :  { %v43_v11 = vand.u32 31, %v41_v10  ;;  %v42_v14 = vshrl.u32 %v41_v10, 5 }
  0x8c   :  { %v44_v13 = vsub.s32 32, %v43_v11  ;;  %v46_v16 = vshll.u32 %v304_v15, %v43_v11  ;;  %v49_v18 = vshll.u32 %v305_v17, %v43_v11  ;;  %v52_v22 = vshll.u32 %v306_v20, %v43_v11 }
  0x8d   :  { %v55_v25 = vshll.u32 %v307_v23, %v43_v11  ;;  %v58_v28 = vshll.u32 %v308_v26, %v43_v11  ;;  %vm61_vm1 = vcmp.lt.s32.totalorder %v42_v14, 1  ;;  %vm64_vm2 = vcmp.lt.s32.totalorder %v42_v14, 4 }
  0x8e   :  { %v47_v19 = vshrl.u32 %v305_v17, %v44_v13  ;;  %v50_v21 = vshrl.u32 %v306_v20, %v44_v13  ;;  %v53_v24 = vshrl.u32 %v307_v23, %v44_v13  ;;  %v56_v27 = vshrl.u32 %v308_v26, %v44_v13 }
  0x8f   :  { %v59_v30 = vshrl.u32 %v309_v29, %v44_v13  ;;  %v45_v40 = vshrl.u32 %v304_v15, %v44_v13  ;;  %vm63_vm3 = vcmp.lt.s32.totalorder %v42_v14, 3  ;;  %vm62_vm4 = vcmp.lt.s32.totalorder %v42_v14, 2 }
  0x90   :  { %v48_v32 = vor.u32 %v47_v19, %v46_v16  ;;  %v51_v33 = vor.u32 %v50_v21, %v49_v18  ;;  %v54_v34 = vor.u32 %v53_v24, %v52_v22  ;;  %v57_v35 = vor.u32 %v56_v27, %v55_v25 }
  0x91   :  { %v60_v36 = vor.u32 %v59_v30, %v58_v28  ;;  %v12_v24 = vlaneseq }
  0x92   :  { %v66_v37 = vsel %vm64_vm2, %v54_v34, 2102212464  ;;  %v69_v38 = vsel %vm61_vm1, %v48_v32, %v51_v33  ;;  %v73_v39 = vsel %vm61_vm1, %v51_v33, %v54_v34  ;;  %v70_v41 = vsel %vm64_vm2, %v57_v35, 920167782 }
  0x93   :  { %v74_v42 = vsel %vm64_vm2, %v60_v36, 1326507024  ;;  %v71_v43 = vsel %vm63_vm3, %v54_v34, %v70_v41  ;;  %v65_v46 = vsel %vm61_vm1, %v45_v40, %v48_v32  ;;  %v67_v47 = vsel %vm63_vm3, %v51_v33, %v66_v37 }
  0x94   :  { %v75_v44 = vsel %vm63_vm3, %v57_v35, %v74_v42  ;;  %v72_v48 = vsel %vm62_vm4, %v69_v38, %v71_v43  ;;  %v68_v54 = vsel %vm62_vm4, %v65_v46, %v67_v47  ;;  %v13_v26 = vand.u32 127, %v12_v24 }
  0x95   :  { %v76_v49 = vsel %vm62_vm4, %v73_v39, %v75_v44  ;;  %v341_v52 = vmul.u32.u64.low %v77_v45, %v72_v48  ;;  %v342_v53 = vmul.u32.u64.high %v77_v45, %v72_v48, %v341_v52  ;;  %v84_v56 = vmul.u32 %v77_v45, %v68_v54 }
  0x96   :  { %v338_v50 = vmul.u32.u64.low %v77_v45, %v76_v49  ;;  %v339_v51 = vmul.u32.u64.high %v77_v45, %v76_v49, %v338_v50  ;;  %vm14_vm9 = vcmp.ge.s32.totalorder %v13_v26, 32  ;;  %vm239_vm1 = vcmask 523264  }
  0x97   :  { %v87_v55 = vadd.s32 1, %v342_v53 }
  0x98   :  { %vm86_vm5 = vc.u32 %v339_v51, %v341_v52  ;;  %v85_v5 = vadd.s32 %v341_v52, %v339_v51 }
  0x99   :  { %v88_v57 = vsel %vm86_vm5, %v87_v55, %v342_v53 }
  0x9a   :  { %v89_v58 = vadd.s32 %v88_v57, %v84_v56 }
  0x9c   :  { %v90_v59 = vadd.s32 536870912, %v89_v58 }
  0x9e   :  { %v91_v60 = vshrl.u32 %v90_v59, 30 }
  0xa0   :  { %v92_v61 = vshll.u32 %v91_v60, 30  ;;  %v115_v19 = vsub.s32 4, %v91_v60 }
  0xa2   :  { %v93_v62 = vsub.s32 %v89_v58, %v92_v61  ;;  %v116_v22 = vsel %vm31_vm7, %v115_v19, %v91_v60 }
  0xa3   :  { %v118_v23 = vsel %vm30_vm8, 0, %v116_v22 }
  0xa4   :  { %v95_v63 = vsub.s32 0, %v93_v62  ;;  %v225_v25 = vadd.s32 3, %v118_v23  ;;  %v122_v27 = vand.u32 3, %v118_v23 }
  0xa6   :  { %v257_v0 = vmin.u32 %v95_v63, %v93_v62  ;;  %v226_v28 = vand.u32 3, %v225_v25  ;;  %vm127_vm10 = vcmp.eq.s32.totalorder %v122_v27, 2  ;;  %vm124_vm12 = vcmp.eq.s32.totalorder %v122_v27, 0 }
  0xa7   :  { %vm123_vm14 = vcmp.lt.s32.totalorder %v122_v27, 2 }
  0xa8   :  { %v97_v1 = vclz %v257_v0  ;;  %vm231_vm11 = vcmp.eq.s32.totalorder %v226_v28, 2  ;;  %vm228_vm13 = vcmp.eq.s32.totalorder %v226_v28, 0  ;;  %vm227_vm15 = vcmp.lt.s32.totalorder %v226_v28, 2 }
  0xaa   :  { %v258_v2 = vadd.s32 4294967294, %v97_v1 }
  0xac   :  { %vm259_vm6 = vcmp.lt.s32.totalorder %v258_v2, 0 }
  0xad   :  { %v100_v3 = vsel %vm259_vm6, 0, %v258_v2 }
  0xae   :  { %v101_v6 = vsub.s32 32, %v100_v3  ;;  %v105_v7 = vsub.s32 4294967266, %v100_v3  ;;  %v102_v8 = vshll.u32 %v93_v62, %v100_v3 }
  0xb0   :  { %v103_v10 = vshrl.u32 %v85_v5, %v101_v6  ;;  %v106_v11 = vadd.s32 127, %v105_v7 }
  0xb2   :  { %v104_v12 = vor.u32 %v103_v10, %v102_v8  ;;  %v107_v13 = vshll.u32 %v106_v11, 23 }
  0xb4   :  { %v108_v14 = vor.u32 4788187, %v107_v13  ;;  %v111_v16 = vcvt.s32.f32 %v104_v12 }
  0xb6   :  { %v109_v15 = vand.u32 2147483647, %v108_v14 }
  0xb8   :  { %v112_v17 = vmul.f32 %v111_v16, %v109_v15 }
  0xba   :  { %v113_v18 = vxor.u32 2147483648, %v112_v17 }
  0xbc   :  { %v114_v20 = vsel %vm31_vm7, %v113_v18, %v112_v17 }
  0xbd   :  { %v117_v21 = vsel %vm30_vm8, %v332_v4, %v114_v20 }
  0xbe   :  { %277 = vcosq.f32 %v117_v21 }
  0xbf   :  { %279 = vsinq.f32 %v117_v21 }
  0xcb   :  { %v278_v29 = vpop.eup %277 }
  0xcc   :  { %v280_v30 = vpop.eup %279  ;;  %v128_v31 = vxor.u32 2147483648, %v278_v29 }
  0xcd   :  { %v125_v32 = vxor.u32 2147483648, %v280_v30 }
  0xce   :  { %v129_v9 = vsel %vm127_vm10, %v128_v31, %v280_v30  ;;  %v233_v33 = vsel %vm231_vm11, %v128_v31, %v280_v30 }
  0xcf   :  { %v126_v34 = vsel %vm124_vm12, %v278_v29, %v125_v32  ;;  %v230_v35 = vsel %vm228_vm13, %v278_v29, %v125_v32 }
  0xd0   :  { %v130_v36 = vsel %vm123_vm14, %v126_v34, %v129_v9  ;;  %v234_v37 = vsel %vm227_vm15, %v230_v35, %v233_v33 }
  0xd1   :  { %v131_v38 = vsel %vm121_vm0, nan, %v130_v36  ;;  %v235_v39 = vsel %vm121_vm0, nan, %v234_v37 }
  0xd2   :  { %v238_v40 = vsel %vm14_vm9, %v131_v38, %v235_v39 }
  0xd3   :  { %240 = vst.msk [vmem:[#allocation2] sm:$0xff] %vm239_vm1, %v238_v40 }
  0xd4   :  { %292 = shalt.err (!%p289_p4)
}
  0xd5   :  { %250 = dma.vmem_to_hbm [thread:$0]  %s248_s1, 128, %s359_s2, [#allocation3]  }
  0xd6   :  { %301 = dma.done.wait [#allocation3], 128  }
  0xd7   :  { %302 = vsyncadd [#allocation3], 4294967168 }
  0xd8   :  { %254 = vsyncpa [#allocation3], 1 }

</bundles_post_ra>
